<compile_context>
chip_gen: v7x
topology: tpu7x:2x2x1
jax: 0.10.0
libtpu: 0.0.40
codegen_flags: <defaults>
</compile_context>

<pallas_src>
import jax
import jax.numpy as jnp
from jax.experimental import pallas as pl
from jax.experimental.pallas import tpu as pltpu


def _round_up(x: int, m: int) -> int:
    return (x + m - 1) // m * m


def _make_cbow_kernel(vocab: int, tile_v: int, vocab_pad: int):
    """Kernel factory; vocab / tile sizes are trace-time constants."""
    needs_mask = vocab_pad != vocab

    def kernel(h_ref, u_y_ref, u_tab_t_ref, out_ref, acc_ref):
        # h_ref:       (B, E)       f32, resident across the grid
        # u_y_ref:     (B, E)       f32, resident across the grid
        # u_tab_t_ref: (E, TILE_V)  bf16, streamed tile of embedding_u^T
        # out_ref:     (1, 1)       f32 in SMEM (scalar loss)
        # acc_ref:     (B, 1)       f32 VMEM scratch: running sum of sigmoid(-h@U^T)
        j = pl.program_id(0)

        @pl.when(j == 0)
        def _init():
            acc_ref[...] = jnp.zeros_like(acc_ref)

        h = h_ref[...]                                              # (B, E) f32

        # negative logits for this vocab tile: -(h @ U^T); bf16 in, f32 accumulate
        neg_logits = -jnp.dot(
            h.astype(jnp.bfloat16),
            u_tab_t_ref[...],
            preferred_element_type=jnp.float32,
        )                                                           # (B, TILE_V) f32

        sig = jax.nn.sigmoid(neg_logits)                            # f32 epilogue
        if needs_mask:
            # zero out contributions of padded vocab columns (last tile only matters)
            col = jax.lax.broadcasted_iota(jnp.int32, sig.shape, 1) + j * tile_v
            sig = jnp.where(col < vocab, sig, 0.0)

        acc_ref[...] += jnp.sum(sig, axis=1, keepdims=True)         # (B, 1)

        @pl.when(j == pl.num_programs(0) - 1)
        def _finalize():
            u_y = u_y_ref[...]                                      # (B, E) f32
            # positive_score = -logsigmoid(u_y . h), numerically stable, exact f32
            pos_logit = jnp.sum(u_y * h, axis=-1, keepdims=True)    # (B, 1)
            pos_score = -(jnp.minimum(pos_logit, 0.0)
                          - jnp.log1p(jnp.exp(-jnp.abs(pos_logit))))
            neg_score = jnp.log(acc_ref[...])                       # (B, 1)
            out_ref[0, 0] = jnp.mean(pos_score + neg_score)

    return kernel


def cbow_forward(x_positive, y, emb_v, emb_u, *, max_tile_v: int = 8192):
    """CBOW.forward(x_positive, y) -> scalar loss (matches the torch module)."""
    B = x_positive.shape[0]
    V, E = emb_u.shape

    # ---- lane-align the embedding dim (zero padding is mathematically free) ----
    E_pad = _round_up(E, 128)
    if E_pad != E:
        emb_v = jnp.pad(emb_v, ((0, 0), (0, E_pad - E)))
        emb_u = jnp.pad(emb_u, ((0, 0), (0, E_pad - E)))

    # ---- glue: embedding gathers + context mean (fused by XLA), kept in f32 ----
    h = jnp.take(emb_v, x_positive, axis=0).mean(axis=1)            # (B, E_pad)
    u_y = jnp.take(emb_u, y, axis=0).reshape(B, E_pad)              # (B, E_pad)

    # ---- negative table: pre-transposed, bf16, vocab padded to a tile multiple ----
    tile_v = min(_round_up(V, 128), max_tile_v)
    V_pad = _round_up(V, tile_v)
    u_tab_t = emb_u.astype(jnp.bfloat16).T                          # (E_pad, V)
    if V_pad != V:
        u_tab_t = jnp.pad(u_tab_t, ((0, 0), (0, V_pad - V)))        # masked in-kernel

    grid = (V_pad // tile_v,)
    kernel = _make_cbow_kernel(V, tile_v, V_pad)

    out = pl.pallas_call(
        kernel,
        out_shape=jax.ShapeDtypeStruct((1, 1), jnp.float32),
        grid_spec=pltpu.PrefetchScalarGridSpec(
            num_scalar_prefetch=0,
            grid=grid,
            in_specs=[
                pl.BlockSpec((B, E_pad), lambda j: (0, 0)),         # h     (resident)
                pl.BlockSpec((B, E_pad), lambda j: (0, 0)),         # u_y   (resident)
                pl.BlockSpec((E_pad, tile_v), lambda j: (0, j)),    # U^T   (streamed)
            ],
            out_specs=pl.BlockSpec(memory_space=pltpu.MemorySpace.SMEM),
            scratch_shapes=[pltpu.VMEM((B, 1), jnp.float32)],       # sum-sigmoid acc
        ),
        compiler_params=pltpu.CompilerParams(
            dimension_semantics=("arbitrary",),      # vocab axis is a reduction
            vmem_limit_bytes=32 * 1024 * 1024,       # tiles sized to fit v7x (64 MiB) too
        ),
    )(h, u_y, u_tab_t)
    return out[0, 0]


if __name__ == "__main__":
    VOCAB = 64           # vocab_size
    EMBED = 100          # embedding_size (the torch forward hardcodes reshape(..., 1, 100))
    B = 8                # batch
    C = 4                # context window size

    key = jax.random.PRNGKey(0)
    k1, k2, k3, k4 = jax.random.split(key, 4)

    emb_v = jax.random.normal(k1, (VOCAB, EMBED), dtype=jnp.float32)
    emb_u = jax.random.normal(k2, (VOCAB, EMBED), dtype=jnp.float32)
    x_positive = jax.random.randint(k3, (B, C), 0, VOCAB, dtype=jnp.int32)
    y = jax.random.randint(k4, (B,), 0, VOCAB, dtype=jnp.int32)

    loss = jax.jit(cbow_forward)(x_positive, y, emb_v, emb_u)
    jax.block_until_ready(loss)

    # ---- pure-f32 reference of the module math ----
    h_r = jnp.take(emb_v, x_positive, axis=0).mean(axis=1)          # (B, 100)
    u_y_r = jnp.take(emb_u, y, axis=0)                              # (B, 100)
    pos_logit = jnp.sum(u_y_r * h_r, axis=-1)
    pos = -(jnp.minimum(pos_logit, 0.0)
            - jnp.log1p(jnp.exp(-jnp.abs(pos_logit))))
    neg_f32 = jnp.log(jnp.sum(jax.nn.sigmoid(-(h_r @ emb_u.T)), axis=1))
    ref_f32 = jnp.mean(pos + neg_f32)

    # ---- precision-matched reference (bf16 inputs to the big matmul, f32 accumulate) ----
    neg_l = -jnp.dot(h_r.astype(jnp.bfloat16), emb_u.astype(jnp.bfloat16).T,
                     preferred_element_type=jnp.float32)
    ref_bf16 = jnp.mean(pos + jnp.log(jnp.sum(jax.nn.sigmoid(neg_l), axis=1)))

    assert jnp.allclose(loss, ref_bf16, rtol=1e-4, atol=1e-4), (loss, ref_bf16)
    assert jnp.allclose(loss, ref_f32, rtol=5e-2, atol=5e-2), (loss, ref_f32)

    print("KERNEL_OK")
</pallas_src>

<mosaic_0001>
module attributes {stable_mosaic.version = 11 : i64} {
  func.func @kernel(%arg0: i32, %arg1: memref<8x128xf32, #tpu.memory_space<vmem>>, %arg2: memref<8x128xf32, #tpu.memory_space<vmem>>, %arg3: memref<128x128xbf16, #tpu.memory_space<vmem>>, %arg4: memref<1x1xf32, #tpu.memory_space<smem>>, %arg5: memref<8x1xf32, #tpu.memory_space<vmem>>) attributes {dimension_semantics = [#tpu.dimension_semantics<arbitrary>], iteration_bounds = array<i64: 1>, scalar_prefetch = 0 : i64, scratch_operands = 1 : i64, tpu.core_type = #tpu.core_type<tc>, window_params = [{pipeline_mode = #tpu.pipeline_mode<synchronous>, transform_indices = @transform_0, window_bounds = array<i64: 8, 128>}, {pipeline_mode = #tpu.pipeline_mode<synchronous>, transform_indices = @transform_1, window_bounds = array<i64: 8, 128>}, {transform_indices = @transform_2, window_bounds = array<i64: 128, 128>}, {transform_indices = @transform_3, window_bounds = array<i64: 1, 1>}]} {
    %c0_i32 = arith.constant 0 : i32
    %0 = arith.cmpi eq, %arg0, %c0_i32 : i32
    %1 = arith.extui %0 : i1 to i32
    %c0_i32_0 = arith.constant 0 : i32
    %2 = arith.cmpi ne, %1, %c0_i32_0 : i32
    scf.if %2 {
      %cst_14 = arith.constant 0.000000e+00 : f32
      %30 = vector.broadcast %cst_14 : f32 to vector<8x1xf32>
      %c0_15 = arith.constant 0 : index
      %c0_16 = arith.constant 0 : index
      %31 = vector.load %arg5[%c0_15, %c0_16] : memref<8x1xf32, #tpu.memory_space<vmem>>, vector<8x1xf32>
      tpu.vector_store %arg5[%c0_15, %c0_16], %30 {strides = array<i32>} : memref<8x1xf32, #tpu.memory_space<vmem>>, vector<8x1xf32>,
    } else {
    }
    %c0 = arith.constant 0 : index
    %c0_1 = arith.constant 0 : index
    %3 = vector.load %arg1[%c0, %c0_1] : memref<8x128xf32, #tpu.memory_space<vmem>>, vector<8x128xf32>
    %4 = arith.truncf %3 : vector<8x128xf32> to vector<8x128xbf16>
    %c0_2 = arith.constant 0 : index
    %c0_3 = arith.constant 0 : index
    %5 = vector.load %arg3[%c0_2, %c0_3] : memref<128x128xbf16, #tpu.memory_space<vmem>>, vector<128x128xbf16>
    %cst = arith.constant dense<0.000000e+00> : vector<8x128xf32>
    %6 = tpu.matmul %4, %5, %cst {dimension_numbers = #tpu.dot_dimension_numbers<[1], [0], [0], [1], [0, 0, 1, 1], [], []>} : vector<8x128xbf16>, vector<128x128xbf16>, vector<8x128xf32> -> vector<8x128xf32>
    %cst_4 = arith.constant 0.000000e+00 : f32
    %7 = vector.broadcast %cst_4 : f32 to vector<8x128xf32>
    %8 = arith.subf %7, %6 : vector<8x128xf32>
    %9 = arith.negf %8 : vector<8x128xf32>
    %10 = math.exp %9 : vector<8x128xf32>
    %cst_5 = arith.constant 1.000000e+00 : f32
    %11 = vector.broadcast %cst_5 : f32 to vector<8x128xf32>
    %12 = arith.addf %11, %10 : vector<8x128xf32>
    %13 = arith.divf %11, %12 : vector<8x128xf32>
    %14 = tpu.iota {dimensions = array<i32: 1>} : vector<8x128xi32>
    %c128_i32 = arith.constant 128 : i32
    %15 = arith.muli %arg0, %c128_i32 : i32
    %16 = vector.broadcast %15 : i32 to vector<8x128xi32>
    %17 = arith.addi %14, %16 : vector<8x128xi32>
    %c64_i32 = arith.constant 64 : i32
    %18 = vector.broadcast %c64_i32 : i32 to vector<8x128xi32>
    %19 = arith.cmpi slt, %17, %18 : vector<8x128xi32>
    %cst_6 = arith.constant 0.000000e+00 : f32
    %20 = vector.broadcast %cst_6 : f32 to vector<8x128xf32>
    %21 = arith.select %19, %13, %20 : vector<8x128xi1>, vector<8x128xf32>
    %c0_7 = arith.constant 0 : index
    %c0_8 = arith.constant 0 : index
    %22 = vector.load %arg5[%c0_7, %c0_8] : memref<8x1xf32, #tpu.memory_space<vmem>>, vector<8x1xf32>
    %cst_9 = arith.constant dense<0.000000e+00> : vector<8xf32>
    %23 = vector.multi_reduction <add>, %21, %cst_9 [1] : vector<8x128xf32> to vector<8xf32>
    %24 = vector.shape_cast %23 : vector<8xf32> to vector<8x1xf32>
    %25 = arith.addf %22, %24 : vector<8x1xf32>
    %c0_10 = arith.constant 0 : index
    %c0_11 = arith.constant 0 : index
    %26 = vector.load %arg5[%c0_10, %c0_11] : memref<8x1xf32, #tpu.memory_space<vmem>>, vector<8x1xf32>
    tpu.vector_store %arg5[%c0_10, %c0_11], %25 {strides = array<i32>} : memref<8x1xf32, #tpu.memory_space<vmem>>, vector<8x1xf32>,
    %c0_i32_12 = arith.constant 0 : i32
    %27 = arith.cmpi eq, %arg0, %c0_i32_12 : i32
    %28 = arith.extui %27 : i1 to i32
    %c0_i32_13 = arith.constant 0 : i32
    %29 = arith.cmpi ne, %28, %c0_i32_13 : i32
    scf.if %29 {
      %c0_14 = arith.constant 0 : index
      %c0_15 = arith.constant 0 : index
      %30 = vector.load %arg2[%c0_14, %c0_15] : memref<8x128xf32, #tpu.memory_space<vmem>>, vector<8x128xf32>
      %31 = arith.mulf %30, %3 : vector<8x128xf32>
      %cst_16 = arith.constant dense<0.000000e+00> : vector<8xf32>
      %32 = vector.multi_reduction <add>, %31, %cst_16 [1] : vector<8x128xf32> to vector<8xf32>
      %33 = vector.shape_cast %32 : vector<8xf32> to vector<8x1xf32>
      %cst_17 = arith.constant 0.000000e+00 : f32
      %34 = vector.broadcast %cst_17 : f32 to vector<8x1xf32>
      %35 = arith.minimumf %33, %34 : vector<8x1xf32>
      %36 = math.absf %33 : vector<8x1xf32>
      %cst_18 = arith.constant 0.000000e+00 : f32
      %37 = vector.broadcast %cst_18 : f32 to vector<8x1xf32>
      %38 = arith.subf %37, %36 : vector<8x1xf32>
      %39 = math.exp %38 : vector<8x1xf32>
      %40 = math.log1p %39 : vector<8x1xf32>
      %41 = arith.subf %35, %40 : vector<8x1xf32>
      %cst_19 = arith.constant 0.000000e+00 : f32
      %42 = vector.broadcast %cst_19 : f32 to vector<8x1xf32>
      %43 = arith.subf %42, %41 : vector<8x1xf32>
      %c0_20 = arith.constant 0 : index
      %c0_21 = arith.constant 0 : index
      %44 = vector.load %arg5[%c0_20, %c0_21] : memref<8x1xf32, #tpu.memory_space<vmem>>, vector<8x1xf32>
      %45 = math.log %44 : vector<8x1xf32>
      %46 = arith.addf %43, %45 : vector<8x1xf32>
      %47 = vector.shape_cast %46 : vector<8x1xf32> to vector<1x8x1xf32>
      %cst_22 = arith.constant dense<0.000000e+00> : vector<1xf32>
      %48 = vector.multi_reduction <add>, %47, %cst_22 [1, 2] : vector<1x8x1xf32> to vector<1xf32>
      %49 = vector.shape_cast %48 : vector<1xf32> to vector<1x1x1xf32>
      %50 = vector.extract %49[0, 0, 0] : f32 from vector<1x1x1xf32>
      %cst_23 = arith.constant 8.000000e+00 : f32
      %51 = arith.divf %50, %cst_23 : f32
      %c0_24 = arith.constant 0 : index
      %c0_25 = arith.constant 0 : index
      %52 = memref.load %arg4[%c0_24, %c0_25] : memref<1x1xf32, #tpu.memory_space<smem>>
      memref.store %51, %arg4[%c0_24, %c0_25] : memref<1x1xf32, #tpu.memory_space<smem>>
    } else {
    }
    return
  }
  func.func @transform_0(%arg0: i32) -> (i32, i32) {
    %c0_i32 = arith.constant 0 : i32
    %c0_i32_0 = arith.constant 0 : i32
    %c0_i32_1 = arith.constant 0 : i32
    return %c0_i32, %c0_i32_0 : i32, i32
  }
  func.func @transform_1(%arg0: i32) -> (i32, i32) {
    %c0_i32 = arith.constant 0 : i32
    %c0_i32_0 = arith.constant 0 : i32
    %c0_i32_1 = arith.constant 0 : i32
    return %c0_i32, %c0_i32_0 : i32, i32
  }
  func.func @transform_2(%arg0: i32) -> (i32, i32) {
    %c0_i32 = arith.constant 0 : i32
    %c0_i32_0 = arith.constant 0 : i32
    return %c0_i32, %arg0 : i32, i32
  }
  func.func @transform_3(%arg0: i32) -> (i32, i32) {
    %c0_i32 = arith.constant 0 : i32
    %c0_i32_0 = arith.constant 0 : i32
    %c0_i32_1 = arith.constant 0 : i32
    return %c0_i32, %c0_i32_0 : i32, i32
  }
}

</mosaic_0001>

<bundles_post_ra>
// kernel: cbow_forward.1
= control target key start
LH: loop header
LB: loop body
LE: loop exit
PB: predicated region body
PF: predicated region fallthrough
CT: control target
= control target key end

     0   :  { %v276_v1 = vmov 0.0   ;;  %vm277_vm0 = vmmov 0   ;;  %s344_s0 = inlined_call_operand.vmem [shape: f32[8,128], index: 0, kind: input, shape index: {}]   ;;  %s345_s1 = inlined_call_operand.vmem [shape: f32[8,128], index: 1, kind: input, shape index: {}]   ;;  %s346_s2 = inlined_call_operand.vmem [shape: bf16[128,128], index: 2, kind: input, shape index: {}]   ;;  %s347_s3 = inlined_call_operand.hbm [shape: f32[1,1], index: 3, kind: output, shape index: {}]  }
   0x1   :  { %v246_v0 = vld [vmem:[%s346_s2] sm:$0xff]   ;;  %221 = vmatprep.subr.bf16.mxu0 %v276_v1  ;;  %v247_v2 = vld [vmem:[%s346_s2 + $0x8] sm:$0xff]   ;;  %237 = vmatprep.mubr.msk.bf16.mxu0 %vm277_vm0, %v276_v1  ;;  %v248_v3 = vld [vmem:[%s346_s2 + $0x10] sm:$0xff]  }
   0x2   :  { %222 = vmatpush3.bf16.msra.mxu0 %v246_v0  ;;  %v22_v4 = vld [vmem:[%s344_s0] sm:$0xff] }
   0x3   :  { %223 = vmatprep.subr.bf16.mxu0 %v276_v1  ;;  %v151_v5 = vld [vmem:[%s345_s1] sm:$0xff] }
   0x6   :  { %224 = vmatpush3.bf16.msra.mxu0 %v247_v2 }
   0x7   :  { %225 = vmatprep.subr.bf16.mxu0 %v276_v1 }
   0x8   :  { %8 = vsyncpa [#allocation4], 0  ;;  %v152_v6 = vmul.f32 %v151_v5, %v22_v4  ;;  %v249_v7 = vld [vmem:[%s346_s2 + $0x18] sm:$0xff]   ;;  %v250_v8 = vld [vmem:[%s346_s2 + $0x20] sm:$0xff]   ;;  %v23_v12 = vpack.c.bf16 %v22_v4, %v22_v4  ;;  %v135_v21 = vlaneseq  ;;  %vm20_vm2 = vcmask 7168   ;;  %s264_s6 = scalar_lea.hbm %s347_s3, 16 }
   0x9   :  { %v251_v9 = vld [vmem:[%s346_s2 + $0x28] sm:$0xff]   ;;  %v252_v10 = vld [vmem:[%s346_s2 + $0x30] sm:$0xff]   ;;  %v253_v11 = vld [vmem:[%s346_s2 + $0x38] sm:$0xff]   ;;  %21 = vst.msk [vmem:[#allocation2] sm:$0xff] %vm20_vm2, %v276_v1  ;;  %p265_p0 = scmp.ne.s32.totalorder %s347_s3, %s264_s6  ;;  %p268_p1 = scmp.lt.u32.totalorder %s264_s6, %s347_s3 }
   0xa   :  { %226 = vmatpush3.bf16.msra.mxu0 %v248_v3  ;;  %153 = vadd.xlane.f32.xlu0 %v152_v6  ;;  %v136_v22 = vand.u32 127, %v135_v21 }
   0xb   :  { %227 = vmatprep.subr.bf16.mxu0 %v276_v1  ;;  %p270_p2 = pnand %p268_p1, %p265_p0 }
   0xc   :  { %vm140_vm1 = vcmp.lt.s32.totalorder %v136_v22, 64 }
   0xe   :  { %228 = vmatpush3.bf16.msra.mxu0 %v249_v7 }
   0xf   :  { %229 = vmatprep.subr.bf16.mxu0 %v276_v1 }
  0x10   :  { %v142_v31 = vld [vmem:[#allocation2] sm:$0xff] }
  0x12   :  { %230 = vmatpush3.bf16.msra.mxu0 %v250_v8 }
  0x13   :  { %231 = vmatprep.subr.bf16.mxu0 %v276_v1 }
  0x16   :  { %232 = vmatpush3.bf16.msra.mxu0 %v251_v9 }
  0x17   :  { %233 = vmatprep.subr.bf16.mxu0 %v276_v1 }
  0x1a   :  { %234 = vmatpush3.bf16.msra.mxu0 %v252_v10 }
  0x1b   :  { %235 = vmatprep.subr.bf16.mxu0 %v276_v1 }
  0x1e   :  { %236 = vmatpush3.bf16.msra.mxu0 %v253_v11 }
  0x21   :  { %238 = vmatmul.mubr.bf16.vlgmr.msra.gmra.mrb[0].mxu0 %v23_v12 }
  0x97   :  { %v154_v25 = vpop.xlane.xlu0 %153 }
  0x98   :  { %v156_v26 = vand.u32 2147483647, %v154_v25  ;;  %v155_v41 = vmin.f32 %v154_v25, 0.0 }
  0x9a   :  { %v157_v27 = vsub.f32 0.0, %v156_v26 }
  0x9c   :  { %v158_v28 = vmul.f32 1.442695, %v157_v27 }
  0xf4   :  { %v122_v13 = vpop.f32.mrb[0].mxu0 }
  0xf5   :  { %v128_v14 = vsub.f32 0.0, %v122_v13  ;;  %v239_v15 = vpop.f32.mrb[1].mxu0 }
  0xf6   :  { %v125_v16 = vpop.f32.mrb[2].mxu0 }
  0xf7   :  { %v211_v17 = vmul.f32 -1.442695, %v128_v14  ;;  %v240_v18 = vpop.f32.mrb[3].mxu0 }
  0xf9   :  { %254 = vpow2.f32 %v211_v17 }
 0x103   :  { %v255_v19 = vpop.eup %254 }
 0x104   :  { %v132_v20 = vadd.f32 1.0, %v255_v19 }
 0x106   :  { %256 = vrcp.f32 %v132_v20 }
 0x107   :  { %258 = vpow2.f32 %v158_v28 }
 0x110   :  { %v257_v23 = vpop.eup %256 }
 0x111   :  { %v141_v24 = vsel %vm140_vm1, %v257_v23, 0.0  ;;  %v259_v29 = vpop.eup %258 }
 0x112   :  { %143 = vadd.xlane.f32.xlu0 %v141_v24  ;;  %v160_v30 = vadd.f32 1.0, %v259_v29  ;;  %v163_v34 = vmul.f32 -0.5, %v259_v29  ;;  %v166_v37 = vand.u32 2147483647, %v259_v29 }
 0x114   :  { %260 = vlog2.f32 %v160_v30  ;;  %v164_v35 = vadd.f32 1.0, %v163_v34  ;;  %vm167_vm3 = vcmp.lt.f32.partialorder %v166_v37, 0.0004427343 }
 0x116   :  { %v165_v40 = vmul.f32 %v259_v29, %v164_v35 }
 0x11e   :  { %v261_v36 = vpop.eup %260 }
 0x11f   :  { %v162_v39 = vmul.f32 0.6931472, %v261_v36 }
 0x121   :  { %v168_v42 = vsel %vm167_vm3, %v165_v40, %v162_v39 }
 0x122   :  { %v169_v43 = vsub.f32 %v155_v41, %v168_v42 }
 0x124   :  { %v170_v45 = vsub.f32 0.0, %v169_v43 }
 0x19f   :  { %v144_v32 = vpop.xlane.xlu0 %143 }
 0x1a0   :  { %v145_v33 = vadd.f32 %v144_v32, %v142_v31 }
 0x1a2   :  { %147 = vst.msk [vmem:[#allocation2] sm:$0xff] %vm20_vm2, %v145_v33 }
 0x1a9   :  { %v171_v38 = vld [vmem:[#allocation2] sm:$0xff] }
 0x1aa   :  { %262 = vlog2.f32 %v171_v38 }
 0x1b4   :  { %v263_v44 = vpop.eup %262 }
 0x1b5   :  { %v173_v46 = vmul.f32 0.6931472, %v263_v44 }
 0x1b7   :  { %v174_v47 = vadd.f32 %v173_v46, %v170_v45 }
 0x1b9   :  { %v175_v48 = vsel %vm20_vm2, %v174_v47, 0.0 }
 0x1ba   :  { %176 = vadd.xlane.f32.xlu1 %v175_v48 }
 0x247   :  { %v177_v49 = vpop.xlane.xlu1 %176 }
 0x248   :  { %v178_v50 = vrot.slane %v177_v49, 4 }
 0x24a   :  { %v179_v51 = vadd.f32 %v178_v50, %v177_v49 }
 0x24c   :  { %v180_v52 = vrot.slane %v179_v51, 2 }
 0x24e   :  { %v181_v53 = vadd.f32 %v180_v52, %v179_v51 }
 0x250   :  { %v182_v54 = vrot.slane %v181_v53, 1 }
 0x252   :  { %v183_v55 = vadd.f32 %v182_v54, %v181_v53 }
 0x254   :  { %241 = vpush %v183_v55 }
 0x285   :  { %s242_s2 = spop %241 }
 0x286   :  { %s187_s30 = smul.f32 0.125, %s242_s2 }
 0x288   :  { %189 = sst [smem:[#allocation3]] %s187_s30 }
 0x289   :  { %273 = shalt.err (!%p270_p2)
}
 0x28a   :  { %s278_s11 = smov [#allocation3]  }
 0x28b   :  { %197 = dma.smem_to_hbm %s278_s11, 16, %s347_s3, [#allocation4]  }
 0x28c   :  { %274 = dma.done.wait [#allocation4], 16  }
 0x28d   :  { %275 = vsyncadd [#allocation4], 4294967280 }
 0x28e   :  { %201 = sfence }
 0x28f   :  { %202 = vsyncpa [#allocation4], 1 }

</bundles_post_ra>
